<compile_context>
chip_gen: v5e
topology: v5e:2x2
jax: 0.10.0
libtpu: 0.0.40
codegen_flags: <defaults>
</compile_context>

<pallas_src>
import functools

import numpy as np
import jax
import jax.numpy as jnp
from jax.experimental import pallas as pl
from jax.experimental.pallas import tpu as pltpu


def _residual_block_kernel(x_ref, w1_ref, w2_ref, o_ref, *, H, W, compute_dtype):
    # x_ref : (B, C8, HW)     input, channels zero-padded to C8 (multiple of 8)
    # w1_ref: (C8, 9*C8 + 8)  conv1 weights; bias folded into column 9*C8
    # w2_ref: (C8, 9*C8 + 8)  conv2 weights; padded out-channel rows are zero
    # o_ref : (B, C8, HW)     output; padded channel rows stay exactly zero
    B, C8, HW = x_ref.shape
    N = B * HW
    cd = compute_dtype

    # Fold the batch into the lane axis: one invocation, one wide lane-dense dot.
    x = jnp.concatenate([x_ref[b] for b in range(B)], axis=1)          # (C8, N), f32

    # lane index -> per-image (row, col); derived from p % HW so the 3x3 edge masks
    # also zero the cross-image leakage introduced by rolling across image seams.
    p = jax.lax.broadcasted_iota(jnp.int32, (C8, N), 1)
    p_img = (p & (HW - 1)) if (HW & (HW - 1)) == 0 else (p % HW)
    if (W & (W - 1)) == 0:                      # power-of-two W: cheap bit ops
        row = p_img >> (W.bit_length() - 1)
        col = p_img & (W - 1)
    else:
        row = p_img // W
        col = p_img - row * W

    # Hoisted tap validity masks: computed once, reused by both convolutions.
    up, down = row >= 1, row <= H - 2
    left, right = col >= 1, col <= W - 2
    taps = []
    for dy in (-1, 0, 1):
        for dx in (-1, 0, 1):
            m = None
            if dy == -1:
                m = up
            elif dy == 1:
                m = down
            if dx == -1:
                m = left if m is None else (m & left)
            elif dx == 1:
                m = right if m is None else (m & right)
            taps.append((dy * W + dx, m))

    ones_blk = jnp.ones((8, N), dtype=cd)       # bias rows (bias folded into weights)

    def im2col(a):
        """(C8, N) -> (9*C8 + 8, N): 3x3 taps via lane rolls + hoisted edge masks."""
        blocks = []
        for off, m in taps:
            if off == 0:
                blocks.append(a)
            else:
                shifted = pltpu.roll(a, shift=(-off) % N, axis=1)
                blocks.append(jnp.where(m, shifted, jnp.zeros_like(shifted)))
        blocks.append(ones_blk)
        return jnp.concatenate(blocks, axis=0)  # tile-aligned sublane concat

    # conv1 (3x3, SAME) + bias + ReLU — single MXU dot: M=C8, K=9*C8+8, N=B*HW.
    p1 = im2col(x.astype(cd))
    y1 = jnp.maximum(
        jnp.dot(w1_ref[...].astype(cd), p1, preferred_element_type=jnp.float32), 0.0)

    # conv2 (3x3, SAME) + bias.
    p2 = im2col(y1.astype(cd))
    y2 = jnp.dot(w2_ref[...].astype(cd), p2, preferred_element_type=jnp.float32)

    # Identity shortcut + final ReLU (f32); padded rows are 0 + 0 -> 0.
    out = jnp.maximum(y2 + x.astype(jnp.float32), 0.0).astype(o_ref.dtype)
    for b in range(B):
        o_ref[b] = out[:, b * HW:(b + 1) * HW]  # static, lane-aligned, full-tile stores


def residual_block(x_nchw, w1, b1, w2, b2, *, compute_dtype=jnp.float32):
    """x_nchw: (B, C, H, W) f32; w1/w2 in PyTorch OIHW layout (Cout, Cin, 3, 3)."""
    B, C, H, W = x_nchw.shape
    Cout = w1.shape[0]
    assert Cout == C, "identity shortcut requires in_channels == out_channels"
    # TODO(synk): stride>1 / downsample branch of ResidualBlock not implemented
    # (module defaults: stride=1, downsample=None).
    HW = H * W
    C8 = max(8, -(-C // 8) * 8)                 # channels padded to sublane tile
    K = 9 * C8 + 8                              # 9 taps + ones block for the bias

    # NCHW -> (B, C8, HW): reshape only (no transpose); skip the pad when C is already
    # a multiple of 8 to avoid an extra HBM copy of the activations.
    x_flat = x_nchw.reshape(B, C, HW)
    if C8 != C:
        x_flat = jnp.pad(x_flat, ((0, 0), (0, C8 - C), (0, 0)))

    def pack_weight(w, b):
        # OIHW -> (out rows, tap*C8 + in-channel cols), zero-padded; bias folded into
        # the first of 8 extra columns (matched by the ones block in the patch).
        wt = jnp.pad(jnp.transpose(w, (0, 2, 3, 1)),
                     ((0, C8 - w.shape[0]), (0, 0), (0, 0), (0, C8 - w.shape[1])))
        bias_cols = jnp.zeros((C8, 8), w.dtype).at[:b.shape[0], 0].set(b)
        return jnp.concatenate([wt.reshape(C8, 9 * C8), bias_cols], axis=1)  # (C8, K)

    w1_r = pack_weight(w1, b1)
    w2_r = pack_weight(w2, b2)

    kernel = functools.partial(_residual_block_kernel, H=H, W=W,
                               compute_dtype=compute_dtype)

    out_flat = pl.pallas_call(
        kernel,
        out_shape=jax.ShapeDtypeStruct((B, C8, HW), x_nchw.dtype),
        grid_spec=pltpu.PrefetchScalarGridSpec(
            num_scalar_prefetch=0,
            grid=(1,),                          # single step: batch lives in the lanes
            in_specs=[
                pl.BlockSpec((B, C8, HW), lambda i: (0, 0, 0)),
                pl.BlockSpec((C8, K), lambda i: (0, 0)),
                pl.BlockSpec((C8, K), lambda i: (0, 0)),
            ],
            out_specs=pl.BlockSpec((B, C8, HW), lambda i: (0, 0, 0)),
        ),
        compiler_params=pltpu.CompilerParams(
            dimension_semantics=("arbitrary",)),
    )(x_flat, w1_r, w2_r)

    return out_flat[:, :Cout, :].reshape(B, Cout, H, W)


def _reference_forward(x_nchw, w1, b1, w2, b2):
    dn = ('NCHW', 'OIHW', 'NCHW')
    y = jax.lax.conv_general_dilated(x_nchw, w1, (1, 1), 'SAME', dimension_numbers=dn)
    y = jnp.maximum(y + b1[None, :, None, None], 0.0)
    y = jax.lax.conv_general_dilated(y, w2, (1, 1), 'SAME', dimension_numbers=dn)
    y = y + b2[None, :, None, None]
    return jnp.maximum(y + x_nchw, 0.0)


if __name__ == "__main__":
    B, C, H, W = 2, 4, 16, 16            # in_channels = out_channels = 4, stride = 1
    key = jax.random.PRNGKey(0)
    kx, kw1, kb1, kw2, kb2 = jax.random.split(key, 5)

    x = jax.random.normal(kx, (B, C, H, W), dtype=jnp.float32)
    fan_in = C * 3 * 3
    bound = 1.0 / np.sqrt(fan_in)        # PyTorch default conv init range
    w1 = jax.random.uniform(kw1, (C, C, 3, 3), jnp.float32, -bound, bound)
    b1 = jax.random.uniform(kb1, (C,), jnp.float32, -bound, bound)
    w2 = jax.random.uniform(kw2, (C, C, 3, 3), jnp.float32, -bound, bound)
    b2 = jax.random.uniform(kb2, (C,), jnp.float32, -bound, bound)

    out = jax.block_until_ready(residual_block(x, w1, b1, w2, b2))
    ref = jax.block_until_ready(_reference_forward(x, w1, b1, w2, b2))
    np.testing.assert_allclose(np.asarray(out), np.asarray(ref), rtol=1e-4, atol=1e-4)
    print("KERNEL_OK")
</pallas_src>

<mosaic_0001>
module attributes {stable_mosaic.version = 11 : i64} {
  func.func @_residual_block_kernel(%arg0: i32, %arg1: memref<2x8x256xf32, #tpu.memory_space<vmem>>, %arg2: memref<8x80xf32, #tpu.memory_space<vmem>>, %arg3: memref<8x80xf32, #tpu.memory_space<vmem>>, %arg4: memref<2x8x256xf32, #tpu.memory_space<vmem>>) attributes {dimension_semantics = [#tpu.dimension_semantics<arbitrary>], iteration_bounds = array<i64: 1>, scalar_prefetch = 0 : i64, scratch_operands = 0 : i64, tpu.core_type = #tpu.core_type<tc>, window_params = [{pipeline_mode = #tpu.pipeline_mode<synchronous>, transform_indices = @transform_0, window_bounds = array<i64: 2, 8, 256>}, {pipeline_mode = #tpu.pipeline_mode<synchronous>, transform_indices = @transform_1, window_bounds = array<i64: 8, 80>}, {pipeline_mode = #tpu.pipeline_mode<synchronous>, transform_indices = @transform_2, window_bounds = array<i64: 8, 80>}, {pipeline_mode = #tpu.pipeline_mode<synchronous>, transform_indices = @transform_3, window_bounds = array<i64: 2, 8, 256>}]} {
    %c0 = arith.constant 0 : index
    %c0_0 = arith.constant 0 : index
    %c0_1 = arith.constant 0 : index
    %0 = vector.load %arg1[%c0, %c0_0, %c0_1] : memref<2x8x256xf32, #tpu.memory_space<vmem>>, vector<1x8x256xf32>
    %1 = vector.shape_cast %0 : vector<1x8x256xf32> to vector<8x256xf32>
    %c1 = arith.constant 1 : index
    %c0_2 = arith.constant 0 : index
    %c0_3 = arith.constant 0 : index
    %2 = vector.load %arg1[%c1, %c0_2, %c0_3] : memref<2x8x256xf32, #tpu.memory_space<vmem>>, vector<1x8x256xf32>
    %3 = vector.shape_cast %2 : vector<1x8x256xf32> to vector<8x256xf32>
    %4 = tpu.concatenate %1, %3 in 1 : vector<8x256xf32>, vector<8x256xf32> -> vector<8x512xf32>
    %5 = tpu.iota {dimensions = array<i32: 1>} : vector<8x512xi32>
    %c255_i32 = arith.constant 255 : i32
    %6 = vector.broadcast %c255_i32 : i32 to vector<8x512xi32>
    %7 = arith.andi %5, %6 : vector<8x512xi32>
    %c4_i32 = arith.constant 4 : i32
    %8 = vector.broadcast %c4_i32 : i32 to vector<8x512xi32>
    %9 = arith.shrsi %7, %8 : vector<8x512xi32>
    %c15_i32 = arith.constant 15 : i32
    %10 = vector.broadcast %c15_i32 : i32 to vector<8x512xi32>
    %11 = arith.andi %7, %10 : vector<8x512xi32>
    %c1_i32 = arith.constant 1 : i32
    %12 = vector.broadcast %c1_i32 : i32 to vector<8x512xi32>
    %13 = arith.cmpi sge, %9, %12 : vector<8x512xi32>
    %c14_i32 = arith.constant 14 : i32
    %14 = vector.broadcast %c14_i32 : i32 to vector<8x512xi32>
    %15 = arith.cmpi sle, %9, %14 : vector<8x512xi32>
    %c1_i32_4 = arith.constant 1 : i32
    %16 = vector.broadcast %c1_i32_4 : i32 to vector<8x512xi32>
    %17 = arith.cmpi sge, %11, %16 : vector<8x512xi32>
    %c14_i32_5 = arith.constant 14 : i32
    %18 = vector.broadcast %c14_i32_5 : i32 to vector<8x512xi32>
    %19 = arith.cmpi sle, %11, %18 : vector<8x512xi32>
    %20 = arith.andi %13, %17 : vector<8x512xi1>
    %21 = arith.andi %13, %19 : vector<8x512xi1>
    %22 = arith.andi %15, %17 : vector<8x512xi1>
    %23 = arith.andi %15, %19 : vector<8x512xi1>
    %cst = arith.constant 1.000000e+00 : f32
    %24 = vector.broadcast %cst : f32 to vector<8x512xf32>
    %c17_i32 = arith.constant 17 : i32
    %25 = tpu.dynamic_rotate %4 by %c17_i32 dim 1 : vector<8x512xf32>, i32 -> vector<8x512xf32>
    %cst_6 = arith.constant 0.000000e+00 : f32
    %26 = vector.broadcast %cst_6 : f32 to vector<8x512xf32>
    %27 = arith.select %20, %25, %26 : vector<8x512xi1>, vector<8x512xf32>
    %c16_i32 = arith.constant 16 : i32
    %28 = tpu.dynamic_rotate %4 by %c16_i32 dim 1 : vector<8x512xf32>, i32 -> vector<8x512xf32>
    %cst_7 = arith.constant 0.000000e+00 : f32
    %29 = vector.broadcast %cst_7 : f32 to vector<8x512xf32>
    %30 = arith.select %13, %28, %29 : vector<8x512xi1>, vector<8x512xf32>
    %c15_i32_8 = arith.constant 15 : i32
    %31 = tpu.dynamic_rotate %4 by %c15_i32_8 dim 1 : vector<8x512xf32>, i32 -> vector<8x512xf32>
    %cst_9 = arith.constant 0.000000e+00 : f32
    %32 = vector.broadcast %cst_9 : f32 to vector<8x512xf32>
    %33 = arith.select %21, %31, %32 : vector<8x512xi1>, vector<8x512xf32>
    %c1_i32_10 = arith.constant 1 : i32
    %34 = tpu.dynamic_rotate %4 by %c1_i32_10 dim 1 : vector<8x512xf32>, i32 -> vector<8x512xf32>
    %cst_11 = arith.constant 0.000000e+00 : f32
    %35 = vector.broadcast %cst_11 : f32 to vector<8x512xf32>
    %36 = arith.select %17, %34, %35 : vector<8x512xi1>, vector<8x512xf32>
    %c511_i32 = arith.constant 511 : i32
    %37 = tpu.dynamic_rotate %4 by %c511_i32 dim 1 : vector<8x512xf32>, i32 -> vector<8x512xf32>
    %cst_12 = arith.constant 0.000000e+00 : f32
    %38 = vector.broadcast %cst_12 : f32 to vector<8x512xf32>
    %39 = arith.select %19, %37, %38 : vector<8x512xi1>, vector<8x512xf32>
    %c497_i32 = arith.constant 497 : i32
    %40 = tpu.dynamic_rotate %4 by %c497_i32 dim 1 : vector<8x512xf32>, i32 -> vector<8x512xf32>
    %cst_13 = arith.constant 0.000000e+00 : f32
    %41 = vector.broadcast %cst_13 : f32 to vector<8x512xf32>
    %42 = arith.select %22, %40, %41 : vector<8x512xi1>, vector<8x512xf32>
    %c496_i32 = arith.constant 496 : i32
    %43 = tpu.dynamic_rotate %4 by %c496_i32 dim 1 : vector<8x512xf32>, i32 -> vector<8x512xf32>
    %cst_14 = arith.constant 0.000000e+00 : f32
    %44 = vector.broadcast %cst_14 : f32 to vector<8x512xf32>
    %45 = arith.select %15, %43, %44 : vector<8x512xi1>, vector<8x512xf32>
    %c495_i32 = arith.constant 495 : i32
    %46 = tpu.dynamic_rotate %4 by %c495_i32 dim 1 : vector<8x512xf32>, i32 -> vector<8x512xf32>
    %cst_15 = arith.constant 0.000000e+00 : f32
    %47 = vector.broadcast %cst_15 : f32 to vector<8x512xf32>
    %48 = arith.select %23, %46, %47 : vector<8x512xi1>, vector<8x512xf32>
    %49 = tpu.concatenate %27, %30, %33, %36, %4, %39, %42, %45, %48, %24 in 0 : vector<8x512xf32>, vector<8x512xf32>, vector<8x512xf32>, vector<8x512xf32>, vector<8x512xf32>, vector<8x512xf32>, vector<8x512xf32>, vector<8x512xf32>, vector<8x512xf32>, vector<8x512xf32> -> vector<80x512xf32>
    %c0_16 = arith.constant 0 : index
    %c0_17 = arith.constant 0 : index
    %50 = vector.load %arg2[%c0_16, %c0_17] : memref<8x80xf32, #tpu.memory_space<vmem>>, vector<8x80xf32>
    %cst_18 = arith.constant dense<0.000000e+00> : vector<8x512xf32>
    %51 = tpu.matmul %50, %49, %cst_18 {dimension_numbers = #tpu.dot_dimension_numbers<[1], [0], [0], [1], [0, 0, 1, 1], [], []>} : vector<8x80xf32>, vector<80x512xf32>, vector<8x512xf32> -> vector<8x512xf32>
    %cst_19 = arith.constant 0.000000e+00 : f32
    %52 = vector.broadcast %cst_19 : f32 to vector<8x512xf32>
    %53 = arith.maximumf %51, %52 : vector<8x512xf32>
    %c17_i32_20 = arith.constant 17 : i32
    %54 = tpu.dynamic_rotate %53 by %c17_i32_20 dim 1 : vector<8x512xf32>, i32 -> vector<8x512xf32>
    %cst_21 = arith.constant 0.000000e+00 : f32
    %55 = vector.broadcast %cst_21 : f32 to vector<8x512xf32>
    %56 = arith.select %20, %54, %55 : vector<8x512xi1>, vector<8x512xf32>
    %c16_i32_22 = arith.constant 16 : i32
    %57 = tpu.dynamic_rotate %53 by %c16_i32_22 dim 1 : vector<8x512xf32>, i32 -> vector<8x512xf32>
    %cst_23 = arith.constant 0.000000e+00 : f32
    %58 = vector.broadcast %cst_23 : f32 to vector<8x512xf32>
    %59 = arith.select %13, %57, %58 : vector<8x512xi1>, vector<8x512xf32>
    %c15_i32_24 = arith.constant 15 : i32
    %60 = tpu.dynamic_rotate %53 by %c15_i32_24 dim 1 : vector<8x512xf32>, i32 -> vector<8x512xf32>
    %cst_25 = arith.constant 0.000000e+00 : f32
    %61 = vector.broadcast %cst_25 : f32 to vector<8x512xf32>
    %62 = arith.select %21, %60, %61 : vector<8x512xi1>, vector<8x512xf32>
    %c1_i32_26 = arith.constant 1 : i32
    %63 = tpu.dynamic_rotate %53 by %c1_i32_26 dim 1 : vector<8x512xf32>, i32 -> vector<8x512xf32>
    %cst_27 = arith.constant 0.000000e+00 : f32
    %64 = vector.broadcast %cst_27 : f32 to vector<8x512xf32>
    %65 = arith.select %17, %63, %64 : vector<8x512xi1>, vector<8x512xf32>
    %c511_i32_28 = arith.constant 511 : i32
    %66 = tpu.dynamic_rotate %53 by %c511_i32_28 dim 1 : vector<8x512xf32>, i32 -> vector<8x512xf32>
    %cst_29 = arith.constant 0.000000e+00 : f32
    %67 = vector.broadcast %cst_29 : f32 to vector<8x512xf32>
    %68 = arith.select %19, %66, %67 : vector<8x512xi1>, vector<8x512xf32>
    %c497_i32_30 = arith.constant 497 : i32
    %69 = tpu.dynamic_rotate %53 by %c497_i32_30 dim 1 : vector<8x512xf32>, i32 -> vector<8x512xf32>
    %cst_31 = arith.constant 0.000000e+00 : f32
    %70 = vector.broadcast %cst_31 : f32 to vector<8x512xf32>
    %71 = arith.select %22, %69, %70 : vector<8x512xi1>, vector<8x512xf32>
    %c496_i32_32 = arith.constant 496 : i32
    %72 = tpu.dynamic_rotate %53 by %c496_i32_32 dim 1 : vector<8x512xf32>, i32 -> vector<8x512xf32>
    %cst_33 = arith.constant 0.000000e+00 : f32
    %73 = vector.broadcast %cst_33 : f32 to vector<8x512xf32>
    %74 = arith.select %15, %72, %73 : vector<8x512xi1>, vector<8x512xf32>
    %c495_i32_34 = arith.constant 495 : i32
    %75 = tpu.dynamic_rotate %53 by %c495_i32_34 dim 1 : vector<8x512xf32>, i32 -> vector<8x512xf32>
    %cst_35 = arith.constant 0.000000e+00 : f32
    %76 = vector.broadcast %cst_35 : f32 to vector<8x512xf32>
    %77 = arith.select %23, %75, %76 : vector<8x512xi1>, vector<8x512xf32>
    %78 = tpu.concatenate %56, %59, %62, %65, %53, %68, %71, %74, %77, %24 in 0 : vector<8x512xf32>, vector<8x512xf32>, vector<8x512xf32>, vector<8x512xf32>, vector<8x512xf32>, vector<8x512xf32>, vector<8x512xf32>, vector<8x512xf32>, vector<8x512xf32>, vector<8x512xf32> -> vector<80x512xf32>
    %c0_36 = arith.constant 0 : index
    %c0_37 = arith.constant 0 : index
    %79 = vector.load %arg3[%c0_36, %c0_37] : memref<8x80xf32, #tpu.memory_space<vmem>>, vector<8x80xf32>
    %cst_38 = arith.constant dense<0.000000e+00> : vector<8x512xf32>
    %80 = tpu.matmul %79, %78, %cst_38 {dimension_numbers = #tpu.dot_dimension_numbers<[1], [0], [0], [1], [0, 0, 1, 1], [], []>} : vector<8x80xf32>, vector<80x512xf32>, vector<8x512xf32> -> vector<8x512xf32>
    %81 = arith.addf %80, %4 : vector<8x512xf32>
    %cst_39 = arith.constant 0.000000e+00 : f32
    %82 = vector.broadcast %cst_39 : f32 to vector<8x512xf32>
    %83 = arith.maximumf %81, %82 : vector<8x512xf32>
    %84 = vector.extract_strided_slice %83 {offsets = [0, 0], sizes = [8, 256], strides = [1, 1]} : vector<8x512xf32> to vector<8x256xf32>
    %c0_40 = arith.constant 0 : index
    %c0_41 = arith.constant 0 : index
    %c0_42 = arith.constant 0 : index
    %85 = vector.load %arg4[%c0_40, %c0_41, %c0_42] : memref<2x8x256xf32, #tpu.memory_space<vmem>>, vector<1x8x256xf32>
    %86 = vector.shape_cast %85 : vector<1x8x256xf32> to vector<8x256xf32>
    %87 = vector.shape_cast %84 : vector<8x256xf32> to vector<1x8x256xf32>
    tpu.vector_store %arg4[%c0_40, %c0_41, %c0_42], %87 {strides = array<i32>} : memref<2x8x256xf32, #tpu.memory_space<vmem>>, vector<1x8x256xf32>,
    %88 = vector.extract_strided_slice %83 {offsets = [0, 256], sizes = [8, 256], strides = [1, 1]} : vector<8x512xf32> to vector<8x256xf32>
    %c1_43 = arith.constant 1 : index
    %c0_44 = arith.constant 0 : index
    %c0_45 = arith.constant 0 : index
    %89 = vector.load %arg4[%c1_43, %c0_44, %c0_45] : memref<2x8x256xf32, #tpu.memory_space<vmem>>, vector<1x8x256xf32>
    %90 = vector.shape_cast %89 : vector<1x8x256xf32> to vector<8x256xf32>
    %91 = vector.shape_cast %88 : vector<8x256xf32> to vector<1x8x256xf32>
    tpu.vector_store %arg4[%c1_43, %c0_44, %c0_45], %91 {strides = array<i32>} : memref<2x8x256xf32, #tpu.memory_space<vmem>>, vector<1x8x256xf32>,
    return
  }
  func.func @transform_0(%arg0: i32) -> (i32, i32, i32) {
    %c0_i32 = arith.constant 0 : i32
    %c0_i32_0 = arith.constant 0 : i32
    %c0_i32_1 = arith.constant 0 : i32
    %c0_i32_2 = arith.constant 0 : i32
    return %c0_i32, %c0_i32_0, %c0_i32_1 : i32, i32, i32
  }
  func.func @transform_1(%arg0: i32) -> (i32, i32) {
    %c0_i32 = arith.constant 0 : i32
    %c0_i32_0 = arith.constant 0 : i32
    %c0_i32_1 = arith.constant 0 : i32
    return %c0_i32, %c0_i32_0 : i32, i32
  }
  func.func @transform_2(%arg0: i32) -> (i32, i32) {
    %c0_i32 = arith.constant 0 : i32
    %c0_i32_0 = arith.constant 0 : i32
    %c0_i32_1 = arith.constant 0 : i32
    return %c0_i32, %c0_i32_0 : i32, i32
  }
  func.func @transform_3(%arg0: i32) -> (i32, i32, i32) {
    %c0_i32 = arith.constant 0 : i32
    %c0_i32_0 = arith.constant 0 : i32
    %c0_i32_1 = arith.constant 0 : i32
    %c0_i32_2 = arith.constant 0 : i32
    return %c0_i32, %c0_i32_0, %c0_i32_1 : i32, i32, i32
  }
}

</mosaic_0001>

<bundles_post_ra>
// kernel: tpu_custom_call.1
= control target key start
LH: loop header
LB: loop body
LE: loop exit
PB: predicated region body
PF: predicated region fallthrough
CT: control target
= control target key end

     0   :  { %8 = vsyncpa [#allocation3], 0  ;;  %s1448_s0 = inlined_call_operand.hbm [shape: f32[2,8,256], index: 0, kind: input, shape index: {}]   ;;  %s1449_s1 = inlined_call_operand.hbm [shape: f32[8,80], index: 1, kind: input, shape index: {}]   ;;  %s1450_s2 = inlined_call_operand.hbm [shape: f32[8,80], index: 2, kind: input, shape index: {}]   ;;  %s1451_s3 = inlined_call_operand.hbm [shape: f32[2,8,256], index: 3, kind: output, shape index: {}]  }
   0x1   :  { %9 = vsyncpa [#allocation6], 0  ;;  %s29_s14 = sshll.u32 %s1449_s1, 4  ;;  %s30_s14 = int_to_ptr.hbm [resolvable:$true] %s29_s14 }
   0x2   :  { %10 = vsyncpa [#allocation4], 0  ;;  %s766_s15 = smov [#allocation5]   ;;  %s15_s19 = sshll.u32 %s1448_s0, 4  ;;  %s16_s19 = int_to_ptr.hbm [resolvable:$true] %s15_s19 }
   0x3   :  { %s31_s16 = sshll.u32 %s766_s15, 4  ;;  %s767_s20 = smov [#allocation2]   ;;  %s32_s16 = int_to_ptr.vmem [resolvable:$true] %s31_s16 }
   0x4   :  { %34 = dma.hbm_to_vmem [thread:$0]  %s30_s14, 128, %s32_s16, [#allocation6]  }
   0x5   :  { %s17_s21 = sshll.u32 %s767_s20, 4  ;;  %s768_s22 = smov 256   ;;  %s18_s21 = int_to_ptr.vmem [resolvable:$true] %s17_s21 }
   0x6   :  { %s769_s23 = smov 16   ;;  %s40_s25 = sshll.u32 %s1450_s2, 4  ;;  %s41_s25 = int_to_ptr.hbm [resolvable:$true] %s40_s25 }
   0x7   :  { %23 = dma.hbm_to_vmem [thread:$0]  %s16_s19, 512, %s18_s21, [#allocation3], %s768_s22, %s768_s22, %s769_s23  }
   0x8   :  { %s770_s26 = smov [#allocation7]  }
   0x9   :  { %s42_s27 = sshll.u32 %s770_s26, 4  ;;  %s43_s27 = int_to_ptr.vmem [resolvable:$true] %s42_s27 }
   0xa   :  { %45 = dma.hbm_to_vmem [thread:$0]  %s41_s25, 128, %s43_s27, [#allocation6]  }
   0xb   :  { %760 = dma.done.wait [#allocation3], 512  }
   0xc   :  { %761 = vsyncadd [#allocation3], 4294966784 }
   0xd   :  { %762 = dma.done.wait [#allocation6], 256  }
   0xe   :  { %763 = vsyncadd [#allocation6], 4294967040  ;;  %v812_v0 = vld [vmem:[#allocation2 + $0x18] sm:$0xff]  ;;  %v814_v1 = vld [vmem:[#allocation2 + $0x10] sm:$0xff]  ;;  %s771_s0 = smov 111   ;;  %s772_s2 = smov 112   ;;  %v63_v5 = vlaneseq }
   0xf   :  { %v816_v2 = vld [vmem:[#allocation2] sm:$0xff]  ;;  %237 = vrot.lane.b32.xlu1 %v812_v0, %s771_s0  ;;  %218 = vrot.lane.b32.xlu2 %v814_v1, %s772_s2  ;;  %s773_s28 = smov 113   ;;  %s774_s29 = smov 127   ;;  %v842_v3 = vld [vmem:[#allocation2 + $0x8] sm:$0xff]  ;;  %v778_v4 = vmov 1.0   ;;  %v1487_v29 = vmov 0 }
  0x10   :  { %231 = vrot.lane.b32.xlu0 %v816_v2, %s771_s0  ;;  %s775_s30 = smov 1   ;;  %s776_s4 = smov 15   ;;  %319 = vmatpush.msra.mxu3 %v778_v4  ;;  %v888_v6 = vand.u32 127, %v63_v5 }
  0x11   :  { %s777_s5 = smov 17   ;;  %299 = vmatpush.msra.mxu2 %v778_v4  ;;  %259 = vmatpush.msra.mxu0 %v778_v4  ;;  %s779_s6 = smov [#allocation8]  }
  0x12   :  { %279 = vmatpush.msra.mxu1 %v778_v4  ;;  %v67_v8 = vadd.s32 384, %v888_v6  ;;  %v66_v13 = vadd.s32 256, %v888_v6  ;;  %vm1459_vm2 = vcmp.lt.s32.totalorder %v888_v6, 111  ;;  %vm1460_vm7 = vcmp.lt.s32.totalorder %v888_v6, 112  ;;  %s562_s7 = sshll.u32 %s779_s6, 4  ;;  %s564_s10 = sshll.u32 %s1451_s3, 4  ;;  %s563_s7 = int_to_ptr.vmem [resolvable:$true] %s562_s7  ;;  %s565_s10 = int_to_ptr.hbm [resolvable:$true] %s564_s10 }
  0x13   :  { %vm1462_vm10 = vcmp.lt.s32.totalorder %v888_v6, 113  ;;  %v65_v34 = vadd.s32 128, %v888_v6  ;;  %v68_v36 = vand.u32 255, %v888_v6  ;;  %vm1454_vm13 = vcmp.lt.s32.totalorder %v888_v6, 127 }
  0x14   :  { %v71_v9 = vand.u32 255, %v67_v8  ;;  %v70_v14 = vand.u32 255, %v66_v13 }
  0x15   :  { %v69_v37 = vand.u32 255, %v65_v34  ;;  %v975_v40 = vshra.s32 %v68_v36, 4  ;;  %v977_v41 = vand.u32 15, %v68_v36  ;;  %v1517_v34 = vmov 0 }
  0x16   :  { %v893_v11 = vshra.s32 %v71_v9, 4  ;;  %v895_v12 = vand.u32 15, %v71_v9  ;;  %v909_v18 = vshra.s32 %v70_v14, 4  ;;  %v911_v19 = vand.u32 15, %v70_v14 }
  0x17   :  { %220 = vrot.lane.b32.xlu2 %v812_v0, %s772_s2  ;;  %214 = vrot.lane.b32.xlu1 %v816_v2, %s772_s2  ;;  %v982_v44 = vshra.s32 %v69_v37, 4  ;;  %v984_v45 = vand.u32 15, %v69_v37  ;;  %vm1463_vm14 = vcmp.le.s32.totalorder %v975_v40, 14  ;;  %vm1466_vm15 = vcmp.le.s32.totalorder %v977_v41, 14 }
  0x18   :  { %235 = vrot.lane.b32.xlu0 %v814_v1, %s771_s0  ;;  %vm1453_vm0 = vcmp.le.s32.totalorder %v893_v11, 14  ;;  %vm1456_vm1 = vcmp.le.s32.totalorder %v895_v12, 14  ;;  %vm1452_vm4 = vcmp.le.s32.totalorder %v909_v18, 14  ;;  %vm1455_vm5 = vcmp.le.s32.totalorder %v911_v19, 14 }
  0x19   :  { %vm905_vm3 = vmand %vm1453_vm0, %vm1456_vm1  ;;  %vm1470_vm8 = vcmp.ge.s32.totalorder %v911_v19, 1  ;;  %vm1457_vm9 = vcmp.ge.s32.totalorder %v895_v12, 1  ;;  %v1504_v9 = vmov 0  ;;  %v1520_v37 = vmov 0 }
  0x1a   :  { %vm923_vm6 = vmand %vm1452_vm4, %vm1455_vm5 }
  0x1b   :  { %vm948_vm11 = vmand %vm1452_vm4, %vm1470_vm8 }
  0x1c   :  { %v1488_v29 = vsel %vm948_vm11, 4294967295, %v1487_v29  ;;  %vm956_vm12 = vmand %vm1453_vm0, %vm1457_vm9  ;;  %vm1464_vm9 = vcmp.ge.s32.totalorder %v984_v45, 1 }
  0x1f   :  { %203 = vrot.lane.b32.xlu2 %v812_v0, %s773_s28  ;;  %201 = vrot.lane.b32.xlu1 %v814_v1, %s773_s28 }
  0x20   :  { %197 = vrot.lane.b32.xlu0 %v816_v2, %s773_s28 }
  0x27   :  { %186 = vrot.lane.b32.xlu2 %v812_v0, %s774_s29  ;;  %184 = vrot.lane.b32.xlu1 %v814_v1, %s774_s29 }
  0x28   :  { %180 = vrot.lane.b32.xlu0 %v816_v2, %s774_s29 }
  0x2f   :  { %165 = vrot.lane.b32.xlu2 %v842_v3, %s775_s30  ;;  %216 = vrot.lane.b32.xlu1 %v842_v3, %s772_s2 }
  0x30   :  { %233 = vrot.lane.b32.xlu0 %v842_v3, %s771_s0 }
  0x37   :  { %199 = vrot.lane.b32.xlu2 %v842_v3, %s773_s28  ;;  %169 = vrot.lane.b32.xlu1 %v812_v0, %s775_s30 }
  0x38   :  { %167 = vrot.lane.b32.xlu0 %v814_v1, %s775_s30 }
  0x3f   :  { %152 = vrot.lane.b32.xlu2 %v812_v0, %s776_s4  ;;  %150 = vrot.lane.b32.xlu1 %v814_v1, %s776_s4 }
  0x40   :  { %148 = vrot.lane.b32.xlu0 %v842_v3, %s776_s4 }
  0x47   :  { %133 = vrot.lane.b32.xlu2 %v814_v1, %s769_s23  ;;  %131 = vrot.lane.b32.xlu1 %v842_v3, %s769_s23 }
  0x48   :  { %182 = vrot.lane.b32.xlu0 %v842_v3, %s774_s29 }
  0x4f   :  { %116 = vrot.lane.b32.xlu2 %v814_v1, %s777_s5  ;;  %114 = vrot.lane.b32.xlu1 %v842_v3, %s777_s5 }
  0x50   :  { %135 = vrot.lane.b32.xlu0 %v812_v0, %s769_s23 }
  0x57   :  { %146 = vrot.lane.b32.xlu2 %v816_v2, %s776_s4  ;;  %163 = vrot.lane.b32.xlu1 %v816_v2, %s775_s30 }
  0x58   :  { %118 = vrot.lane.b32.xlu0 %v812_v0, %s777_s5 }
  0x5f   :  { %112 = vrot.lane.b32.xlu1 %v816_v2, %s777_s5 }
  0x60   :  { %129 = vrot.lane.b32.xlu0 %v816_v2, %s769_s23 }
  0x69   :  { %v890_v7 = vpop.permute.xlu2 %218 }
  0x71   :  { %v221_v10 = vpop.permute.xlu2 %220 }
  0x72   :  { %v223_v28 = vsel %vm1460_vm7, %v890_v7, %v221_v10 }
  0x79   :  { %v204_v20 = vpop.permute.xlu2 %203 }
  0x81   :  { %v238_v15 = vpop.permute.xlu1 %237  ;;  %v187_v27 = vpop.permute.xlu2 %186 }
  0x82   :  { %v232_v17 = vpop.permute.xlu0 %231 }
  0x83   :  { %v243_v21 = vsel %vm1459_vm2, %v238_v15, %v232_v17 }
  0x84   :  { %605 = vmatpush.msk.msra.mxu3 %vm905_vm3, %v243_v21 }
  0x89   :  { %v215_v22 = vpop.permute.xlu1 %214  ;;  %v970_v38 = vpop.permute.xlu2 %165 }
  0x8a   :  { %v236_v24 = vpop.permute.xlu0 %235  ;;  %v226_v25 = vsel %vm1460_vm7, %v221_v10, %v215_v22 }
  0x8b   :  { %v240_v26 = vsel %vm1459_vm2, %v236_v24, %v238_v15  ;;  %606 = vmatpush.msk.msra.mxu3 %vm1453_vm0, %v226_v25  ;;  %vm1458_vm0 = vcmp.le.s32.totalorder %v984_v45, 14 }
  0x8c   :  { %596 = vmatpush.msk.msra.mxu2 %vm923_vm6, %v240_v26  ;;  %v1511_v26 = vmov 0 }
  0x8e   :  { %597 = vmatpush.msk.msra.mxu2 %vm1452_vm4, %v223_v28  ;;  %vm1461_vm4 = vcmp.le.s32.totalorder %v982_v44, 14 }
  0x91   :  { %v202_v30 = vpop.permute.xlu1 %201  ;;  %v200_v48 = vpop.permute.xlu2 %199 }
  0x92   :  { %v198_v32 = vpop.permute.xlu0 %197  ;;  %v206_v33 = vsel %vm1462_vm10, %v202_v30, %v204_v20  ;;  %v207_v59 = vsel %vm1462_vm10, %v200_v48, %v202_v30 }
  0x93   :  { %v209_v35 = vsel %vm1462_vm10, %v204_v20, %v198_v32  ;;  %598 = vmatpush.msk.msra.mxu2 %vm948_vm11, %v206_v33  ;;  %v208_v58 = vsel %vm1462_vm10, %v198_v32, %v200_v48  ;;  %vm1469_vm10 = vcmp.ge.s32.totalorder %v893_v11, 1  ;;  %v248_v33 = vld [vmem:[#allocation5] sm:$0xff] }
  0x94   :  { %607 = vmatpush.msk.msra.mxu3 %vm956_vm12, %v209_v35 }
  0x99   :  { %v973_v39 = vpop.permute.xlu1 %184  ;;  %v153_v62 = vpop.permute.xlu2 %152 }
  0x9a   :  { %v181_v42 = vpop.permute.xlu0 %180  ;;  %v189_v43 = vsel %vm1454_vm13, %v973_v39, %v187_v27 }
  0x9b   :  { %v192_v46 = vsel %vm1454_vm13, %v187_v27, %v181_v42  ;;  %599 = vmatpush.msk.msra.mxu2 %vm1455_vm5, %v189_v43  ;;  %vm1002_vm13 = vmand %vm1463_vm14, %vm1466_vm15 }
  0x9c   :  { %608 = vmatpush.msk.msra.mxu3 %vm1456_vm1, %v192_v46  ;;  %vm1010_vm5 = vmand %vm1461_vm4, %vm1458_vm0  ;;  %vm1465_vm1 = vcmp.ge.s32.totalorder %v977_v41, 1  ;;  %v1526_v46 = vmov 0 }
  0x9d   :  { %304 = vmatpush.msra.mxu2 %v814_v1  ;;  %vm1028_vm0 = vmand %vm1463_vm14, %vm1465_vm1  ;;  %vm1500_vm1 = vcmp.le.s32.totalorder %v895_v12, 14 }
  0x9e   :  { %324 = vmatpush.msra.mxu3 %v812_v0  ;;  %vm1074_vm15 = vmand %vm1469_vm10, %vm1500_vm1  ;;  %vm1471_vm1 = vcmp.lt.s32.totalorder %v888_v6, 16  ;;  %vm1508_vm10 = vcmp.le.s32.totalorder %v977_v41, 14 }
  0xa1   :  { %v217_v49 = vpop.permute.xlu1 %216  ;;  %v134_v15 = vpop.permute.xlu2 %133 }
  0xa2   :  { %v234_v51 = vpop.permute.xlu0 %233  ;;  %v225_v55 = vsel %vm1460_vm7, %v215_v22, %v217_v49  ;;  %v224_v56 = vsel %vm1460_vm7, %v217_v49, %v890_v7  ;;  %vm1467_vm7 = vcmp.lt.s32.totalorder %v888_v6, 1  ;;  %v1501_v7 = vmov 0 }
  0xa3   :  { %v242_v52 = vsel %vm1459_vm2, %v232_v17, %v234_v51  ;;  %v241_v53 = vsel %vm1459_vm2, %v234_v51, %v236_v24  ;;  %vm1041_vm2 = vmand %vm1461_vm4, %vm1464_vm9  ;;  %vm1468_vm9 = vcmp.lt.s32.totalorder %v888_v6, 15  ;;  %v1502_v7 = vsel %vm1074_vm15, 4294967295, %v1501_v7 }
  0xa4   :  { %578 = vmatpush.msk.msra.mxu0 %vm1002_vm13, %v242_v52  ;;  %587 = vmatpush.msk.msra.mxu1 %vm1010_vm5, %v241_v53 }
  0xa6   :  { %579 = vmatpush.msk.msra.mxu0 %vm1463_vm14, %v225_v55  ;;  %588 = vmatpush.msk.msra.mxu1 %vm1461_vm4, %v224_v56  ;;  %vm1499_vm4 = vcmp.ge.s32.totalorder %v895_v12, 1  ;;  %vm1473_vm14 = vcmp.ge.s32.totalorder %v909_v18, 1 }
  0xa8   :  { %580 = vmatpush.msk.msra.mxu0 %vm1028_vm0, %v208_v58  ;;  %589 = vmatpush.msk.msra.mxu1 %vm1041_vm2, %v207_v59 }
  0xa9   :  { %v170_v60 = vpop.permute.xlu1 %169  ;;  %v117_v25 = vpop.permute.xlu2 %116 }
  0xaa   :  { %v168_v61 = vpop.permute.xlu0 %167 }
  0xab   :  { %v173_v63 = vsel %vm1467_vm7, %v970_v38, %v168_v61  ;;  %v172_v5 = vsel %vm1467_vm7, %v168_v61, %v170_v60  ;;  %vm1503_vm7 = vcmp.le.s32.totalorder %v911_v19, 14 }
  0xac   :  { %600 = vmatpush.msk.msra.mxu2 %vm1470_vm8, %v173_v63  ;;  %609 = vmatpush.msk.msra.mxu3 %vm1499_vm4, %v172_v5  ;;  %vm1082_vm4 = vmand %vm1473_vm14, %vm1503_vm7  ;;  %vm1506_vm7 = vcmp.lt.s32.totalorder %v888_v6, 127  ;;  %vm1509_vm8 = vcmp.le.s32.totalorder %v984_v45, 14 }
  0xad   :  { %v1505_v9 = vsel %vm1082_vm4, 4294967295, %v1504_v9 }
  0xb1   :  { %v151_v8 = vpop.permute.xlu1 %150  ;;  %v147_v35 = vpop.permute.xlu2 %146 }
  0xb2   :  { %v149_v10 = vpop.permute.xlu0 %148  ;;  %v155_v13 = vsel %vm1468_vm9, %v151_v8, %v153_v62 }
  0xb3   :  { %v156_v14 = vsel %vm1468_vm9, %v149_v10, %v151_v8  ;;  %610 = vmatpush.msk.msra.mxu3 %vm1074_vm15, %v155_v13  ;;  %vm1507_vm9 = vmmov %vm1506_vm7  ;;  %vm1514_vm15 = vcmp.ge.s32.totalorder %v893_v11, 1 }
  0xb4   :  { %601 = vmatpush.msk.msra.mxu2 %vm1082_vm4, %v156_v14 }
  0xb9   :  { %v132_v17 = vpop.permute.xlu1 %131 }
  0xba   :  { %v183_v20 = vpop.permute.xlu0 %182  ;;  %v139_v21 = vsel %vm1471_vm1, %v132_v17, %v134_v15  ;;  %vm1510_vm1 = vcmp.ge.s32.totalorder %v911_v19, 1 }
  0xbb   :  { %v191_v22 = vsel %vm1506_vm7, %v181_v42, %v183_v20  ;;  %v190_v24 = vsel %vm1507_vm9, %v183_v20, %v973_v39  ;;  %602 = vmatpush.msk.msra.mxu2 %vm1473_vm14, %v139_v21  ;;  %vm1474_vm7 = vcmp.lt.s32.totalorder %v888_v6, 17  ;;  %vm1115_vm9 = vmand %vm1473_vm14, %vm1510_vm1  ;;  %vm1479_vm1 = vcmp.ge.s32.totalorder %v975_v40, 1 }
  0xbc   :  { %581 = vmatpush.msk.msra.mxu0 %vm1508_vm10, %v191_v22  ;;  %590 = vmatpush.msk.msra.mxu1 %vm1509_vm8, %v190_v24  ;;  %v1512_v26 = vsel %vm1115_vm9, 4294967295, %v1511_v26  ;;  %vm1513_vm8 = vcmp.lt.s32.totalorder %v888_v6, 16  ;;  %vm1476_vm10 = vcmask 654336   ;;  %vm1522_vm14 = vcmp.lt.s32.totalorder %v888_v6, 1 }
  0xbe   :  { %264 = vmatpush.msra.mxu0 %v816_v2  ;;  %284 = vmatpush.msra.mxu1 %v842_v3 }
  0xc1   :  { %v115_v27 = vpop.permute.xlu1 %114 }
  0xc2   :  { %v136_v28 = vpop.permute.xlu0 %135  ;;  %v122_v30 = vsel %vm1474_vm7, %v115_v27, %v117_v25  ;;  %vm1515_vm7 = vcmp.ge.s32.totalorder %v895_v12, 1 }
  0xc3   :  { %v138_v32 = vsel %vm1513_vm8, %v134_v15, %v136_v28  ;;  %603 = vmatpush.msk.msra.mxu2 %vm1115_vm9, %v122_v30  ;;  %vm1516_vm8 = vmmov %vm1514_vm15  ;;  %vm1525_vm9 = vcmp.ge.s32.totalorder %v982_v44, 1 }
  0xc4   :  { %611 = vmatpush.msk.msra.mxu3 %vm1514_vm15, %v138_v32  ;;  %604 = vmatmul.msk.f32.vlgmr.msra.gmra.mxu2 %vm1476_vm10, %v248_v33  ;;  %vm1135_vm4 = vmand %vm1516_vm8, %vm1515_vm7  ;;  %vm1519_vm15 = vcmp.le.s32.totalorder %v977_v41, 14  ;;  %vm1524_vm8 = vcmp.le.s32.totalorder %v984_v45, 14 }
  0xc5   :  { %515 = vmatpush.msrb.mxu2 %v778_v4  ;;  %v1518_v34 = vsel %vm1135_vm4, 4294967295, %v1517_v34  ;;  %vm1143_vm10 = vmand %vm1479_vm1, %vm1519_vm15  ;;  %vm1528_vm15 = vcmp.ge.s32.totalorder %v977_v41, 1  ;;  %vm1529_vm1 = vcmp.ge.s32.totalorder %v984_v45, 1 }
  0xc6   :  { %v1521_v37 = vsel %vm1143_vm10, 4294967295, %v1520_v37  ;;  %vm1523_vm7 = vmmov %vm1522_vm14 }
  0xc7   :  { %vm1156_vm11 = vmand %vm1525_vm9, %vm1524_vm8  ;;  %vm1533_vm8 = vcmask 654336  }
  0xc8   :  { %v1527_v46 = vsel %vm1156_vm11, 4294967295, %v1526_v46 }
  0xc9   :  { %v164_v36 = vpop.permute.xlu1 %163 }
  0xca   :  { %v119_v39 = vpop.permute.xlu0 %118  ;;  %v175_v42 = vsel %vm1522_vm14, %v170_v60, %v164_v36  ;;  %v174_v43 = vsel %vm1523_vm7, %v164_v36, %v970_v38  ;;  %vm1530_vm14 = vcmp.lt.s32.totalorder %v888_v6, 17  ;;  %vm1531_vm7 = vcmp.lt.s32.totalorder %v888_v6, 15 }
  0xcb   :  { %582 = vmatpush.msk.msra.mxu0 %vm1528_vm15, %v175_v42  ;;  %591 = vmatpush.msk.msra.mxu1 %vm1529_vm1, %v174_v43  ;;  %v121_v48 = vsel %vm1530_vm14, %v117_v25, %v119_v39  ;;  %v158_v38 = vsel %vm1531_vm7, %v153_v62, %v147_v35  ;;  %vm1532_vm9 = vmmov %vm1531_vm7  ;;  %vm1538_vm7 = vcmp.lt.s32.totalorder %v888_v6, 16 }
  0xcc   :  { %612 = vmatpush.msk.msra.mxu3 %vm1135_vm4, %v121_v48  ;;  %v157_v49 = vsel %vm1532_vm9, %v147_v35, %v149_v10  ;;  %vm1534_vm1 = vmmov %vm1528_vm15  ;;  %vm1535_vm15 = vcmp.ge.s32.totalorder %v975_v40, 1 }
  0xcd   :  { %583 = vmatpush.msk.msra.mxu0 %vm1143_vm10, %v158_v38  ;;  %592 = vmatpush.msk.msra.mxu1 %vm1156_vm11, %v157_v49  ;;  %vm1182_vm14 = vmand %vm1535_vm15, %vm1534_vm1  ;;  %vm1541_vm11 = vcmp.ge.s32.totalorder %v982_v44, 1 }
  0xce   :  { %613 = vmatmul.msk.f32.vlgmr.msra.gmra.mxu3 %vm1533_vm8, %v248_v33  ;;  %vm1539_vm9 = vmmov %vm1538_vm7  ;;  %vm1540_vm8 = vcmp.ge.s32.totalorder %v984_v45, 1 }
  0xcf   :  { %535 = vmatpush.msrb.mxu3 %v778_v4  ;;  %vm1194_vm10 = vmand %vm1541_vm11, %vm1540_vm8  ;;  %vm1551_vm8 = vcmp.lt.s32.totalorder %v888_v6, 112 }
  0xd0   :  { %vm1544_vm4 = vmmov %vm1535_vm15  ;;  %vm1546_vm15 = vcmp.lt.s32.totalorder %v888_v6, 17 }
  0xd1   :  { %v113_v51 = vpop.permute.xlu1 %112  ;;  %vm1545_vm1 = vmmov %vm1541_vm11  ;;  %vm1548_vm11 = vcmask 654336  }
  0xd2   :  { %v130_v52 = vpop.permute.xlu0 %129  ;;  %v124_v59 = vsel %vm1546_vm15, %v119_v39, %v113_v51 }
  0xd3   :  { %v141_v55 = vsel %vm1538_vm7, %v136_v28, %v130_v52  ;;  %v140_v56 = vsel %vm1539_vm9, %v130_v52, %v132_v17  ;;  %vm1547_vm7 = vmmov %vm1546_vm15  ;;  %vm1553_vm15 = vcmp.lt.s32.totalorder %v888_v6, 113 }
  0xd4   :  { %584 = vmatpush.msk.msra.mxu0 %vm1544_vm4, %v141_v55  ;;  %593 = vmatpush.msk.msra.mxu1 %vm1545_vm1, %v140_v56  ;;  %v123_v60 = vsel %vm1547_vm7, %v113_v51, %v115_v27  ;;  %vm1549_vm9 = vmmov %vm1548_vm11  ;;  %vm1550_vm4 = vcmp.lt.s32.totalorder %v888_v6, 111  ;;  %vm1552_vm1 = vcmp.le.s32.totalorder %v975_v40, 14 }
  0xd5   :  { %vm1554_vm7 = vmmov %vm1550_vm4 }
  0xd6   :  { %585 = vmatpush.msk.msra.mxu0 %vm1182_vm14, %v124_v59  ;;  %594 = vmatpush.msk.msra.mxu1 %vm1194_vm10, %v123_v60 }
  0xd7   :  { %586 = vmatmul.msk.f32.vlgmr.msra.gmra.mxu0 %vm1548_vm11, %v248_v33  ;;  %595 = vmatmul.msk.f32.vlgmr.msra.gmra.mxu1 %vm1549_vm9, %v248_v33  ;;  %vm1556_vm11 = vmmov %vm1551_vm8 }
  0xd8   :  { %475 = vmatpush.msrb.mxu0 %v778_v4  ;;  %495 = vmatpush.msrb.mxu1 %v778_v4  ;;  %vm1558_vm9 = vmmov %vm1550_vm4 }
 0x147   :  { %v310_v10 = vpop.f32.mrf.mxu2 }
 0x148   :  { %v1238_v13 = vmax.f32 %v310_v10, 0.0 }
 0x151   :  { %v330_v4 = vpop.f32.mrf.mxu3 }
 0x152   :  { %v1230_v8 = vmax.f32 %v330_v4, 0.0 }
 0x154   :  { %v270_v61 = vpop.f32.mrf.mxu0  ;;  %v290_v62 = vpop.f32.mrf.mxu1 }
 0x155   :  { %v1214_v63 = vmax.f32 %v270_v61, 0.0  ;;  %v1216_v5 = vmax.f32 %v290_v62, 0.0 }
 0x157   :  { %449 = vrot.lane.b32.xlu2 %v1214_v63, %s771_s0  ;;  %387 = vrot.lane.b32.xlu1 %v1216_v5, %s775_s30 }
 0x158   :  { %435 = vrot.lane.b32.xlu0 %v1216_v5, %s772_s2 }
 0x15f   :  { %433 = vrot.lane.b32.xlu2 %v1214_v63, %s772_s2  ;;  %419 = vrot.lane.b32.xlu1 %v1216_v5, %s773_s28 }
 0x160   :  { %355 = vrot.lane.b32.xlu0 %v1216_v5, %s769_s23 }
 0x167   :  { %417 = vrot.lane.b32.xlu2 %v1214_v63, %s773_s28  ;;  %455 = vrot.lane.b32.xlu1 %v1230_v8, %s771_s0 }
 0x168   :  { %339 = vrot.lane.b32.xlu0 %v1216_v5, %s777_s5 }
 0x16f   :  { %401 = vrot.lane.b32.xlu2 %v1214_v63, %s774_s29  ;;  %439 = vrot.lane.b32.xlu1 %v1230_v8, %s772_s2 }
 0x170   :  { %453 = vrot.lane.b32.xlu0 %v1238_v13, %s771_s0 }
 0x177   :  { %423 = vrot.lane.b32.xlu1 %v1230_v8, %s773_s28  ;;  %451 = vrot.lane.b32.xlu2 %v1216_v5, %s771_s0 }
 0x178   :  { %437 = vrot.lane.b32.xlu0 %v1238_v13, %s772_s2 }
 0x17f   :  { %407 = vrot.lane.b32.xlu1 %v1230_v8, %s774_s29  ;;  %371 = vrot.lane.b32.xlu2 %v1216_v5, %s776_s4 }
 0x180   :  { %421 = vrot.lane.b32.xlu0 %v1238_v13, %s773_s28 }
 0x187   :  { %375 = vrot.lane.b32.xlu1 %v1230_v8, %s776_s4  ;;  %403 = vrot.lane.b32.xlu2 %v1216_v5, %s774_s29 }
 0x188   :  { %405 = vrot.lane.b32.xlu0 %v1238_v13, %s774_s29 }
 0x18f   :  { %357 = vrot.lane.b32.xlu1 %v1238_v13, %s769_s23  ;;  %389 = vrot.lane.b32.xlu2 %v1238_v13, %s775_s30 }
 0x190   :  { %391 = vrot.lane.b32.xlu0 %v1230_v8, %s775_s30 }
 0x197   :  { %341 = vrot.lane.b32.xlu1 %v1238_v13, %s777_s5  ;;  %359 = vrot.lane.b32.xlu2 %v1230_v8, %s769_s23 }
 0x198   :  { %373 = vrot.lane.b32.xlu0 %v1238_v13, %s776_s4 }
 0x19f   :  { %369 = vrot.lane.b32.xlu1 %v1214_v63, %s776_s4  ;;  %343 = vrot.lane.b32.xlu2 %v1230_v8, %s777_s5 }
 0x1a0   :  { %385 = vrot.lane.b32.xlu0 %v1214_v63, %s775_s30 }
 0x1a7   :  { %353 = vrot.lane.b32.xlu2 %v1214_v63, %s769_s23 }
 0x1a8   :  { %337 = vrot.lane.b32.xlu0 %v1214_v63, %s777_s5 }
 0x1b1   :  { %v450_v14 = vpop.permute.xlu2 %449 }
 0x1b9   :  { %v434_v15 = vpop.permute.xlu2 %433 }
 0x1c1   :  { %v418_v17 = vpop.permute.xlu2 %417 }
 0x1c9   :  { %v402_v20 = vpop.permute.xlu2 %401  ;;  %v1286_v21 = vpop.permute.xlu1 %387 }
 0x1ca   :  { %v436_v22 = vpop.permute.xlu0 %435 }
 0x1cb   :  { %v443_v30 = vsel %vm1551_vm8, %v434_v15, %v436_v22  ;;  %vm1560_vm8 = vmmov %vm1553_vm15 }
 0x1d1   :  { %v420_v24 = vpop.permute.xlu1 %419  ;;  %v452_v25 = vpop.permute.xlu2 %451 }
 0x1d2   :  { %v1288_v27 = vpop.permute.xlu0 %355  ;;  %v459_v28 = vsel %vm1550_vm4, %v450_v14, %v452_v25  ;;  %v427_v32 = vsel %vm1553_vm15, %v418_v17, %v420_v24 }
 0x1d3   :  { %614 = vmatpush.msk.msrb.mxu0 %vm1002_vm13, %v459_v28  ;;  %vm1555_vm13 = vcmp.lt.s32.totalorder %v888_v6, 127 }
 0x1d5   :  { %615 = vmatpush.msk.msrb.mxu0 %vm1552_vm1, %v443_v30  ;;  %vm1561_vm1 = vmmov %vm1556_vm11 }
 0x1d6   :  { %vm1562_vm15 = vmmov %vm1561_vm1 }
 0x1d7   :  { %616 = vmatpush.msk.msrb.mxu0 %vm1028_vm0, %v427_v32  ;;  %vm1557_vm0 = vcmp.le.s32.totalorder %v977_v41, 14 }
 0x1d9   :  { %v456_v33 = vpop.permute.xlu1 %455  ;;  %v1302_v35 = vpop.permute.xlu2 %371 }
 0x1da   :  { %v1304_v36 = vpop.permute.xlu0 %339  ;;  %v460_v47 = vsel %vm1554_vm7, %v456_v33, %v450_v14  ;;  %vm1565_vm7 = vmmov %vm1555_vm13 }
 0x1db   :  { %641 = vmatpush.msk.msrb.mxu3 %vm905_vm3, %v460_v47  ;;  %vm1559_vm3 = vcmp.le.s32.totalorder %v893_v11, 14 }
 0x1e1   :  { %v440_v39 = vpop.permute.xlu1 %439  ;;  %v404_v42 = vpop.permute.xlu2 %403 }
 0x1e2   :  { %v454_v43 = vpop.permute.xlu0 %453  ;;  %v411_v48 = vsel %vm1555_vm13, %v402_v20, %v404_v42  ;;  %v444_v54 = vsel %vm1556_vm11, %v440_v39, %v434_v15  ;;  %vm1566_vm13 = vmmov %vm1560_vm8 }
 0x1e3   :  { %617 = vmatpush.msk.msrb.mxu0 %vm1557_vm0, %v411_v48  ;;  %v458_v38 = vsel %vm1558_vm9, %v452_v25, %v454_v43  ;;  %v457_v49 = vsel %vm1550_vm4, %v454_v43, %v456_v33  ;;  %642 = vmatpush.msk.msrb.mxu3 %vm1559_vm3, %v444_v54  ;;  %vm1567_vm11 = vmmov %vm1560_vm8  ;;  %vm1568_vm0 = vcmp.le.s32.totalorder %v895_v12, 14  ;;  %vm1572_vm3 = vcmp.le.s32.totalorder %v984_v45, 14 }
 0x1e4   :  { %623 = vmatpush.msk.msrb.mxu1 %vm1010_vm5, %v458_v38  ;;  %632 = vmatpush.msk.msrb.mxu2 %vm923_vm6, %v457_v49  ;;  %vm1563_vm5 = vcmp.le.s32.totalorder %v982_v44, 14  ;;  %vm1564_vm6 = vcmp.le.s32.totalorder %v909_v18, 14  ;;  %vm1570_vm9 = vmmov %vm1565_vm7 }
 0x1e5   :  { %480 = vmatpush.msrb.mxu0 %v1214_v63  ;;  %vm1571_vm4 = vmmov %vm1565_vm7 }
 0x1e9   :  { %v424_v16 = vpop.permute.xlu1 %423  ;;  %v390_v31 = vpop.permute.xlu2 %389 }
 0x1ea   :  { %v438_v51 = vpop.permute.xlu0 %437  ;;  %v428_v52 = vsel %vm1560_vm8, %v424_v16, %v418_v17  ;;  %vm1573_vm8 = vcmp.le.s32.totalorder %v911_v19, 14 }
 0x1eb   :  { %v442_v55 = vsel %vm1561_vm1, %v436_v22, %v438_v51  ;;  %v441_v56 = vsel %vm1562_vm15, %v438_v51, %v440_v39  ;;  %643 = vmatpush.msk.msrb.mxu3 %vm956_vm12, %v428_v52  ;;  %vm1569_vm12 = vnez %v1488_v29  ;;  %vm1575_vm1 = vcmp.ge.s32.totalorder %v911_v19, 1 }
 0x1ec   :  { %624 = vmatpush.msk.msrb.mxu1 %vm1563_vm5, %v442_v55  ;;  %633 = vmatpush.msk.msrb.mxu2 %vm1564_vm6, %v441_v56  ;;  %vm1577_vm5 = vcmp.ge.s32.totalorder %v895_v12, 1  ;;  %vm1578_vm6 = vcmp.lt.s32.totalorder %v888_v6, 15 }
 0x1f1   :  { %v408_v23 = vpop.permute.xlu1 %407  ;;  %v360_v57 = vpop.permute.xlu2 %359 }
 0x1f2   :  { %v422_v50 = vpop.permute.xlu0 %421  ;;  %v412_v59 = vsel %vm1565_vm7, %v408_v23, %v402_v20  ;;  %vm1579_vm7 = vmmov %vm1578_vm6 }
 0x1f3   :  { %v426_v60 = vsel %vm1566_vm13, %v420_v24, %v422_v50  ;;  %v425_v61 = vsel %vm1567_vm11, %v422_v50, %v424_v16  ;;  %644 = vmatpush.msk.msrb.mxu3 %vm1568_vm0, %v412_v59  ;;  %vm1580_vm13 = vnez %v1505_v9  ;;  %vm1581_vm11 = vnez %v1502_v7  ;;  %v465_v24 = vld [vmem:[#allocation7] sm:$0xff] }
 0x1f4   :  { %625 = vmatpush.msk.msrb.mxu1 %vm1041_vm2, %v426_v60  ;;  %634 = vmatpush.msk.msrb.mxu2 %vm1569_vm12, %v425_v61  ;;  %vm1574_vm2 = vcmp.lt.s32.totalorder %v888_v6, 1  ;;  %vm1582_vm0 = vcmp.lt.s32.totalorder %v888_v6, 16 }
 0x1f5   :  { %540 = vmatpush.msrb.mxu3 %v1230_v8  ;;  %v394_v29 = vsel %vm1574_vm2, %v1286_v21, %v390_v31  ;;  %vm1576_vm15 = vmmov %vm1574_vm2  ;;  %vm1588_vm2 = vnez %v1512_v26 }
 0x1f6   :  { %vm1583_vm12 = vmmov %vm1582_vm0 }
 0x1f9   :  { %v376_v62 = vpop.permute.xlu1 %375 }
 0x1fa   :  { %v406_v63 = vpop.permute.xlu0 %405 }
 0x1fb   :  { %v410_v4 = vsel %vm1570_vm9, %v404_v42, %v406_v63  ;;  %v409_v10 = vsel %vm1571_vm4, %v406_v63, %v408_v23  ;;  %vm1584_vm9 = vcmp.ge.s32.totalorder %v909_v18, 1  ;;  %vm1585_vm4 = vcmp.ge.s32.totalorder %v893_v11, 1 }
 0x1fc   :  { %626 = vmatpush.msk.msrb.mxu1 %vm1572_vm3, %v410_v4  ;;  %635 = vmatpush.msk.msrb.mxu2 %vm1573_vm8, %v409_v10  ;;  %vm1586_vm3 = vcmp.lt.s32.totalorder %v888_v6, 17 }
 0x1fd   :  { %vm1587_vm8 = vmmov %vm1586_vm3 }
 0x1fe   :  { %500 = vmatpush.msrb.mxu1 %v1216_v5  ;;  %520 = vmatpush.msrb.mxu2 %v1238_v13  ;;  %v344_v5 = vpop.permute.xlu2 %343 }
 0x200   :  { %636 = vmatpush.msk.msrb.mxu2 %vm1575_vm1, %v394_v29  ;;  %vm1589_vm1 = vnez %v1518_v34 }
 0x201   :  { %v358_v8 = vpop.permute.xlu1 %357 }
 0x202   :  { %v392_v14 = vpop.permute.xlu0 %391  ;;  %v362_v12 = vsel %vm1582_vm0, %v1288_v27, %v358_v8  ;;  %v361_v19 = vsel %vm1583_vm12, %v358_v8, %v360_v57  ;;  %vm1596_vm0 = vcmp.lt.s32.totalorder %v888_v6, 15 }
 0x203   :  { %v393_v15 = vsel %vm1576_vm15, %v390_v31, %v392_v14  ;;  %vm1590_vm15 = vcmask 654336   ;;  %vm1597_vm12 = vmmov %vm1596_vm0 }
 0x204   :  { %645 = vmatpush.msk.msrb.mxu3 %vm1577_vm5, %v393_v15  ;;  %vm1591_vm5 = vmmov %vm1590_vm15 }
 0x206   :  { %v354_v30 = vpop.permute.xlu2 %353 }
 0x209   :  { %v342_v17 = vpop.permute.xlu1 %341 }
 0x20a   :  { %v374_v20 = vpop.permute.xlu0 %373  ;;  %v346_v9 = vsel %vm1586_vm3, %v1304_v36, %v342_v17  ;;  %v345_v7 = vsel %vm1587_vm8, %v342_v17, %v344_v5  ;;  %vm1600_vm3 = vcmp.lt.s32.totalorder %v888_v6, 16 }
 0x20b   :  { %v378_v13 = vsel %vm1578_vm6, %v1302_v35, %v374_v20  ;;  %v377_v22 = vsel %vm1579_vm7, %v374_v20, %v376_v62  ;;  %vm1592_vm6 = vcmp.lt.s32.totalorder %v888_v6, 1  ;;  %vm1601_vm8 = vmmov %vm1600_vm3 }
 0x20c   :  { %637 = vmatpush.msk.msrb.mxu2 %vm1580_vm13, %v378_v13  ;;  %646 = vmatpush.msk.msrb.mxu3 %vm1581_vm11, %v377_v22  ;;  %vm1593_vm7 = vmmov %vm1592_vm6  ;;  %vm1594_vm13 = vcmp.ge.s32.totalorder %v977_v41, 1  ;;  %vm1595_vm11 = vcmp.ge.s32.totalorder %v984_v45, 1  ;;  %v364_v41 = vsel %vm1600_vm3, %v360_v57, %v354_v30  ;;  %v363_v45 = vsel %vm1601_vm8, %v354_v30, %v1288_v27 }
 0x20e   :  { %638 = vmatpush.msk.msrb.mxu2 %vm1584_vm9, %v362_v12  ;;  %647 = vmatpush.msk.msrb.mxu3 %vm1585_vm4, %v361_v19  ;;  %vm1598_vm9 = vnez %v1521_v37  ;;  %vm1599_vm4 = vnez %v1527_v46 }
 0x210   :  { %639 = vmatpush.msk.msrb.mxu2 %vm1588_vm2, %v346_v9  ;;  %648 = vmatpush.msk.msrb.mxu3 %vm1589_vm1, %v345_v7  ;;  %vm1602_vm2 = vcmp.ge.s32.totalorder %v975_v40, 1  ;;  %vm1603_vm1 = vcmp.ge.s32.totalorder %v982_v44, 1 }
 0x211   :  { %640 = vmatmul.msk.f32.vlgmr.msrb.gmra.mxu2 %vm1590_vm15, %v465_v24  ;;  %649 = vmatmul.msk.f32.vlgmr.msrb.gmra.mxu3 %vm1591_vm5, %v465_v24  ;;  %v370_v11 = vpop.permute.xlu1 %369  ;;  %vm1604_vm15 = vcmp.lt.s32.totalorder %v888_v6, 17 }
 0x212   :  { %v386_v18 = vpop.permute.xlu0 %385  ;;  %v380_v26 = vsel %vm1596_vm0, %v376_v62, %v370_v11  ;;  %v379_v34 = vsel %vm1597_vm12, %v370_v11, %v1302_v35  ;;  %vm1605_vm5 = vmmov %vm1604_vm15 }
 0x213   :  { %v396_v25 = vsel %vm1592_vm6, %v392_v14, %v386_v18  ;;  %v395_v28 = vsel %vm1593_vm7, %v386_v18, %v1286_v21  ;;  %vm1606_vm6 = vcmask 654336  }
 0x214   :  { %618 = vmatpush.msk.msrb.mxu0 %vm1594_vm13, %v396_v25  ;;  %627 = vmatpush.msk.msrb.mxu1 %vm1595_vm11, %v395_v28  ;;  %vm1607_vm7 = vmmov %vm1606_vm6 }
 0x216   :  { %619 = vmatpush.msk.msrb.mxu0 %vm1598_vm9, %v380_v26  ;;  %628 = vmatpush.msk.msrb.mxu1 %vm1599_vm4, %v379_v34 }
 0x218   :  { %620 = vmatpush.msk.msrb.mxu0 %vm1602_vm2, %v364_v41  ;;  %629 = vmatpush.msk.msrb.mxu1 %vm1603_vm1, %v363_v45 }
 0x21a   :  { %v338_v21 = vpop.permute.xlu0 %337 }
 0x21b   :  { %v348_v37 = vsel %vm1604_vm15, %v344_v5, %v338_v21  ;;  %v347_v46 = vsel %vm1605_vm5, %v338_v21, %v1304_v36 }
 0x21c   :  { %621 = vmatpush.msk.msrb.mxu0 %vm1182_vm14, %v348_v37  ;;  %630 = vmatpush.msk.msrb.mxu1 %vm1194_vm10, %v347_v46 }
 0x21d   :  { %622 = vmatmul.msk.f32.vlgmr.msrb.gmra.mxu0 %vm1606_vm6, %v465_v24  ;;  %631 = vmatmul.msk.f32.vlgmr.msrb.gmra.mxu1 %vm1607_vm7, %v465_v24 }
 0x294   :  { %v526_v40 = vpop.f32.mrf.mxu2  ;;  %v546_v44 = vpop.f32.mrf.mxu3 }
 0x295   :  { %v527_v27 = vadd.f32 %v526_v40, %v814_v1  ;;  %v547_v32 = vadd.f32 %v546_v44, %v812_v0 }
 0x297   :  { %v551_v33 = vmax.f32 %v527_v27, 0.0  ;;  %v552_v35 = vmax.f32 %v547_v32, 0.0 }
 0x299   :  { %556 = vst [vmem:[#allocation8 + $0x10] sm:$0xff] %v551_v33 }
 0x29a   :  { %v486_v6 = vpop.f32.mrf.mxu0  ;;  %v506_v36 = vpop.f32.mrf.mxu1  ;;  %557 = vst [vmem:[#allocation8 + $0x18] sm:$0xff] %v552_v35 }
 0x29b   :  { %v487_v53 = vadd.f32 %v486_v6, %v816_v2  ;;  %v507_v58 = vadd.f32 %v506_v36, %v842_v3 }
 0x29d   :  { %v549_v47 = vmax.f32 %v487_v53, 0.0  ;;  %v550_v1 = vmax.f32 %v507_v58, 0.0 }
 0x29f   :  { %553 = vst [vmem:[#allocation8] sm:$0xff] %v549_v47 }
 0x2a0   :  { %554 = vst [vmem:[#allocation8 + $0x8] sm:$0xff] %v550_v1 }
 0x2a1   :  { %570 = dma.vmem_to_hbm [thread:$0]  %s563_s7, 512, %s565_s10, [#allocation4], %s768_s22, %s768_s22, %s769_s23  }
 0x2a2   :  { %764 = dma.done.wait [#allocation4], 512  }
 0x2a3   :  { %765 = vsyncadd [#allocation4], 4294966784 }
 0x2a4   :  { %575 = vsyncpa [#allocation3], 1 }
 0x2a5   :  { %576 = vsyncpa [#allocation6], 1 }
 0x2a6   :  { %577 = vsyncpa [#allocation4], 1 }

</bundles_post_ra>
